<compile_context>
chip_gen: v5e
topology: v5e:2x2
jax: 0.10.0
libtpu: 0.0.40
codegen_flags: <defaults>
</compile_context>

<pallas_src>
import functools

import jax
import jax.numpy as jnp
from jax.experimental import pallas as pl
from jax.experimental.pallas import tpu as pltpu

BN_EPS = 1e-5
LEAKY_SLOPE = 0.01


# ----------------------------------------------------------------------------- kernels
def _bn_lrelu(h, gamma, beta):
    """Training-mode BatchNorm1d (biased var) folded into scale, then LeakyReLU."""
    inv_b = 1.0 / h.shape[0]
    mean = jnp.sum(h, axis=0, keepdims=True) * inv_b
    c = h - mean                                        # centered two-pass: no cancellation
    var = jnp.sum(c * c, axis=0, keepdims=True) * inv_b
    y = c * (gamma * jax.lax.rsqrt(var + BN_EPS)) + beta
    return jnp.maximum(y, LEAKY_SLOPE * y)              # LeakyReLU, 2 VPU ops


def _kernel_fullk(x_ref, w_ref, gamma_ref, beta_ref, o_ref):
    # x_ref: (B, K)   w_ref: (K, TN)   gamma/beta: (1, TN)   o_ref: (B, TN)
    h = jnp.dot(x_ref[...], w_ref[...], preferred_element_type=jnp.float32)
    o_ref[...] = _bn_lrelu(h, gamma_ref[...], beta_ref[...]).astype(o_ref.dtype)


def _kernel_ktiled(x_ref, w_ref, gamma_ref, beta_ref, o_ref, acc_ref):
    # x_ref: (B, TK)  w_ref: (TK, TN)  acc_ref: (B, TN) f32, resident across K axis.
    k = pl.program_id(1)
    part = jnp.dot(x_ref[...], w_ref[...], preferred_element_type=jnp.float32)

    @pl.when(k == 0)
    def _first():
        acc_ref[...] = part          # direct write: no zero-init + RMW on step 0

    @pl.when(k != 0)
    def _accum():
        acc_ref[...] += part

    @pl.when(k == pl.num_programs(1) - 1)
    def _finalize():
        o_ref[...] = _bn_lrelu(acc_ref[...], gamma_ref[...],
                               beta_ref[...]).astype(o_ref.dtype)


# ----------------------------------------------------------------------------- planning
def _vmem_budget_bytes():
    """Generation-aware (budget for tile picking, explicit scoped-VMEM limit)."""
    try:
        info = pltpu.get_tpu_info()
        cap = int(getattr(info, "vmem_capacity_bytes", 0) or 0)
    except Exception:
        cap = 0
    if cap <= 0:
        cap = 64 << 20                       # conservative fallback (v7x-sized VMEM)
    budget = min(int(cap * 0.40), 48 << 20)  # v7x ~25 MiB, v5e/v6e 48 MiB
    limit = min(int(cap * 0.75), 96 << 20)   # v7x 48 MiB, v5e/v6e 96 MiB
    return budget, max(limit, budget + (4 << 20))


def _pick_tile_n(out_c, candidates=(1024, 512, 256, 128)):
    # Prefer >= 2 blocks along N so the parallel axis can shard over v7x's 2 TCs.
    for t in candidates:
        if out_c % t == 0 and out_c // t >= 2:
            return t
    for t in candidates:
        if out_c % t == 0:
            return t
    return out_c                     # full-axis block (valid even if not 128-multiple)


def _pick_tile_k(in_c, candidates=(1024, 512, 256, 128)):
    for t in candidates:
        if in_c % t == 0:
            return t
    return in_c


def _plan(batch, in_c, out_c, in_bytes, budget_bytes):
    tile_n = _pick_tile_n(out_c)
    # Collapse K when the whole x comfortably fits (no K pipeline, no accumulator).
    tile_k = in_c if batch * in_c * in_bytes <= (4 << 20) else _pick_tile_k(in_c)

    def est(tn, tk):
        full_k = (tk == in_c)
        b = 2 * batch * tk * in_bytes      # x tiles (double-buffered)
        b += 2 * tk * tn * in_bytes        # weight tiles (double-buffered)
        b += 2 * 2 * tn * 4                # gamma / beta tiles
        b += 2 * batch * tn * 4            # output tiles (double-buffered)
        if not full_k:
            b += batch * tn * 4            # f32 accumulator scratch
        return b

    while est(tile_n, tile_k) > budget_bytes:
        if tile_k > 128 and (tile_k // 2) % 128 == 0:
            tile_k //= 2
        elif tile_n > 128 and (tile_n // 2) % 128 == 0:
            tile_n //= 2
        else:
            raise ValueError(
                f"LinearBNAC kernel: batch={batch} working set exceeds the "
                f"{budget_bytes >> 20} MiB VMEM budget even with 128-wide tiles; "
                "reduce the batch.  # TODO(synk): batch grid axis with two-pass BN.")
    return tile_n, tile_k


# ----------------------------------------------------------------------------- call
@functools.partial(jax.jit,
                   static_argnames=("tile_n", "tile_k", "compute_dtype", "vmem_limit"))
def _linear_bnac_call(x, weight, gamma, beta, *, tile_n, tile_k, compute_dtype,
                      vmem_limit):
    B, K = x.shape
    N = weight.shape[0]

    x_c = x.astype(compute_dtype)
    # One cheap XLA transpose to (K, N): kernel contraction is a plain MXU matmul
    # (no per-tile XLU transpose inside the grid loop).
    w_c = weight.astype(compute_dtype).T
    g2 = gamma.reshape(1, N).astype(jnp.float32)
    b2 = beta.reshape(1, N).astype(jnp.float32)

    out_shape = jax.ShapeDtypeStruct((B, N), jnp.float32)

    if tile_k == K:
        # Collapsed-K path: x fully resident, one matmul per N block.
        return pl.pallas_call(
            _kernel_fullk,
            out_shape=out_shape,
            grid_spec=pltpu.PrefetchScalarGridSpec(
                num_scalar_prefetch=0,
                grid=(N // tile_n,),
                in_specs=[
                    pl.BlockSpec((B, K), lambda j: (0, 0)),          # x (resident)
                    pl.BlockSpec((K, tile_n), lambda j: (0, j)),     # weight tile
                    pl.BlockSpec((1, tile_n), lambda j: (0, j)),     # gamma
                    pl.BlockSpec((1, tile_n), lambda j: (0, j)),     # beta
                ],
                out_specs=pl.BlockSpec((B, tile_n), lambda j: (0, j)),
            ),
            compiler_params=pltpu.CompilerParams(
                dimension_semantics=("parallel",),
                vmem_limit_bytes=vmem_limit),
        )(x_c, w_c, g2, b2)

    # K-tiled path: reduction axis last ("arbitrary"), f32 accumulator scratch.
    return pl.pallas_call(
        _kernel_ktiled,
        out_shape=out_shape,
        grid_spec=pltpu.PrefetchScalarGridSpec(
            num_scalar_prefetch=0,
            grid=(N // tile_n, K // tile_k),
            in_specs=[
                pl.BlockSpec((B, tile_k), lambda j, k: (0, k)),        # x tile
                pl.BlockSpec((tile_k, tile_n), lambda j, k: (k, j)),   # weight tile
                pl.BlockSpec((1, tile_n), lambda j, k: (0, j)),        # gamma
                pl.BlockSpec((1, tile_n), lambda j, k: (0, j)),        # beta
            ],
            out_specs=pl.BlockSpec((B, tile_n), lambda j, k: (0, j)),
            scratch_shapes=[pltpu.VMEM((B, tile_n), jnp.float32)],
        ),
        compiler_params=pltpu.CompilerParams(
            dimension_semantics=("parallel", "arbitrary"),
            vmem_limit_bytes=vmem_limit),
    )(x_c, w_c, g2, b2)


def linear_bnac_forward(x, weight, bias, gamma, beta, *, tile_n=None, tile_k=None,
                        compute_dtype=jnp.bfloat16):
    """LinearBNAC hidden-layer forward.  x: (B, in_c); weight: (out_c, in_c);
    bias/gamma/beta: (out_c,).  Dropout is eval-mode identity; the Linear bias is
    intentionally not applied (exactly cancelled by training-mode BN mean subtraction)."""
    del bias
    B, K = x.shape
    N, K2 = weight.shape
    assert K == K2

    in_bytes = jnp.dtype(compute_dtype).itemsize
    budget, vmem_limit = _vmem_budget_bytes()
    auto_n, auto_k = _plan(B, K, N, in_bytes, budget)
    if tile_n is None:
        tile_n = auto_n
    if tile_k is None:
        tile_k = auto_k
    assert N % tile_n == 0 and (tile_n % 128 == 0 or tile_n == N), tile_n
    assert K % tile_k == 0 and (tile_k % 128 == 0 or tile_k == K), tile_k

    return _linear_bnac_call(x, weight, gamma, beta,
                             tile_n=tile_n, tile_k=tile_k,
                             compute_dtype=compute_dtype, vmem_limit=vmem_limit)


# ----------------------------------------------------------------------------- reference
def reference_forward(x, weight, bias, gamma, beta, compute_dtype=jnp.float32):
    h = jnp.dot(x.astype(compute_dtype), weight.astype(compute_dtype).T,
                preferred_element_type=jnp.float32)
    h = h + bias  # reference keeps the bias; training-mode BN cancels it exactly
    mean = jnp.mean(h, axis=0, keepdims=True)
    var = jnp.mean((h - mean) ** 2, axis=0, keepdims=True)
    y = (h - mean) / jnp.sqrt(var + BN_EPS) * gamma + beta
    return jnp.where(y >= 0, y, LEAKY_SLOPE * y)


if __name__ == "__main__":
    # Small shapes consistent with LinearBNAC(in_channels=32, out_channels=128).
    B, IN_C, OUT_C = 8, 32, 128

    key = jax.random.PRNGKey(0)
    kx, kw, kb, kg, kbe = jax.random.split(key, 5)

    x = jax.random.normal(kx, (B, IN_C), dtype=jnp.float32)
    bound = IN_C ** -0.5
    weight = jax.random.uniform(kw, (OUT_C, IN_C), jnp.float32, -bound, bound)
    bias = jax.random.uniform(kb, (OUT_C,), jnp.float32, -bound, bound)
    gamma = 1.0 + 0.1 * jax.random.normal(kg, (OUT_C,), dtype=jnp.float32)
    beta = 0.1 * jax.random.normal(kbe, (OUT_C,), dtype=jnp.float32)

    # f32-operand path (reference-accuracy check).
    out_f32 = jax.block_until_ready(
        linear_bnac_forward(x, weight, bias, gamma, beta, compute_dtype=jnp.float32))
    ref_f32 = reference_forward(x, weight, bias, gamma, beta, compute_dtype=jnp.float32)
    assert out_f32.shape == (B, OUT_C)
    err = float(jnp.max(jnp.abs(out_f32 - ref_f32)))
    assert err < 5e-4, err

    # Default bf16 MXU-operand path (f32 accumulation; BN / LeakyReLU stay f32).
    out_bf16 = jax.block_until_ready(
        linear_bnac_forward(x, weight, bias, gamma, beta))
    ref_bf16 = reference_forward(x, weight, bias, gamma, beta, compute_dtype=jnp.bfloat16)
    err = float(jnp.max(jnp.abs(out_bf16 - ref_bf16)))
    assert err < 5e-3, err

    print("KERNEL_OK")
</pallas_src>

<mosaic_0001>
module attributes {stable_mosaic.version = 11 : i64} {
  func.func @_kernel_fullk(%arg0: i32, %arg1: memref<8x32xf32, #tpu.memory_space<vmem>>, %arg2: memref<32x128xf32, #tpu.memory_space<vmem>>, %arg3: memref<1x128xf32, #tpu.memory_space<vmem>>, %arg4: memref<1x128xf32, #tpu.memory_space<vmem>>, %arg5: memref<8x128xf32, #tpu.memory_space<vmem>>) attributes {dimension_semantics = [#tpu.dimension_semantics<parallel>], iteration_bounds = array<i64: 1>, scalar_prefetch = 0 : i64, scratch_operands = 0 : i64, tpu.core_type = #tpu.core_type<tc>, window_params = [{pipeline_mode = #tpu.pipeline_mode<synchronous>, transform_indices = @transform_0, window_bounds = array<i64: 8, 32>}, {transform_indices = @transform_1, window_bounds = array<i64: 32, 128>}, {transform_indices = @transform_2, window_bounds = array<i64: 1, 128>}, {transform_indices = @transform_3, window_bounds = array<i64: 1, 128>}, {transform_indices = @transform_4, window_bounds = array<i64: 8, 128>}]} {
    %c0 = arith.constant 0 : index
    %c0_0 = arith.constant 0 : index
    %0 = vector.load %arg1[%c0, %c0_0] : memref<8x32xf32, #tpu.memory_space<vmem>>, vector<8x32xf32>
    %c0_1 = arith.constant 0 : index
    %c0_2 = arith.constant 0 : index
    %1 = vector.load %arg2[%c0_1, %c0_2] : memref<32x128xf32, #tpu.memory_space<vmem>>, vector<32x128xf32>
    %cst = arith.constant dense<0.000000e+00> : vector<8x128xf32>
    %2 = tpu.matmul %0, %1, %cst {dimension_numbers = #tpu.dot_dimension_numbers<[1], [0], [0], [1], [0, 0, 1, 1], [], []>} : vector<8x32xf32>, vector<32x128xf32>, vector<8x128xf32> -> vector<8x128xf32>
    %c0_3 = arith.constant 0 : index
    %c0_4 = arith.constant 0 : index
    %3 = vector.load %arg3[%c0_3, %c0_4] : memref<1x128xf32, #tpu.memory_space<vmem>>, vector<1x128xf32>
    %c0_5 = arith.constant 0 : index
    %c0_6 = arith.constant 0 : index
    %4 = vector.load %arg4[%c0_5, %c0_6] : memref<1x128xf32, #tpu.memory_space<vmem>>, vector<1x128xf32>
    %cst_7 = arith.constant dense<0.000000e+00> : vector<128xf32>
    %5 = vector.multi_reduction <add>, %2, %cst_7 [0] : vector<8x128xf32> to vector<128xf32>
    %6 = vector.shape_cast %5 : vector<128xf32> to vector<1x128xf32>
    %cst_8 = arith.constant 1.250000e-01 : f32
    %7 = vector.broadcast %cst_8 : f32 to vector<1x128xf32>
    %8 = arith.mulf %6, %7 : vector<1x128xf32>
    %9 = vector.broadcast %8 : vector<1x128xf32> to vector<8x128xf32>
    %10 = arith.subf %2, %9 : vector<8x128xf32>
    %11 = arith.mulf %10, %10 : vector<8x128xf32>
    %cst_9 = arith.constant dense<0.000000e+00> : vector<128xf32>
    %12 = vector.multi_reduction <add>, %11, %cst_9 [0] : vector<8x128xf32> to vector<128xf32>
    %13 = vector.shape_cast %12 : vector<128xf32> to vector<1x128xf32>
    %cst_10 = arith.constant 1.250000e-01 : f32
    %14 = vector.broadcast %cst_10 : f32 to vector<1x128xf32>
    %15 = arith.mulf %13, %14 : vector<1x128xf32>
    %cst_11 = arith.constant 9.99999974E-6 : f32
    %16 = vector.broadcast %cst_11 : f32 to vector<1x128xf32>
    %17 = arith.addf %15, %16 : vector<1x128xf32>
    %18 = math.rsqrt %17 : vector<1x128xf32>
    %19 = arith.mulf %3, %18 : vector<1x128xf32>
    %20 = vector.broadcast %19 : vector<1x128xf32> to vector<8x128xf32>
    %21 = arith.mulf %10, %20 : vector<8x128xf32>
    %22 = vector.broadcast %4 : vector<1x128xf32> to vector<8x128xf32>
    %23 = arith.addf %21, %22 : vector<8x128xf32>
    %cst_12 = arith.constant 0.00999999977 : f32
    %24 = vector.broadcast %cst_12 : f32 to vector<8x128xf32>
    %25 = arith.mulf %24, %23 : vector<8x128xf32>
    %26 = arith.maximumf %23, %25 : vector<8x128xf32>
    %c0_13 = arith.constant 0 : index
    %c0_14 = arith.constant 0 : index
    %27 = vector.load %arg5[%c0_13, %c0_14] : memref<8x128xf32, #tpu.memory_space<vmem>>, vector<8x128xf32>
    tpu.vector_store %arg5[%c0_13, %c0_14], %26 {strides = array<i32>} : memref<8x128xf32, #tpu.memory_space<vmem>>, vector<8x128xf32>,
    return
  }
  func.func @transform_0(%arg0: i32) -> (i32, i32) {
    %c0_i32 = arith.constant 0 : i32
    %c0_i32_0 = arith.constant 0 : i32
    %c0_i32_1 = arith.constant 0 : i32
    return %c0_i32, %c0_i32_0 : i32, i32
  }
  func.func @transform_1(%arg0: i32) -> (i32, i32) {
    %c0_i32 = arith.constant 0 : i32
    %c0_i32_0 = arith.constant 0 : i32
    return %c0_i32, %arg0 : i32, i32
  }
  func.func @transform_2(%arg0: i32) -> (i32, i32) {
    %c0_i32 = arith.constant 0 : i32
    %c0_i32_0 = arith.constant 0 : i32
    return %c0_i32, %arg0 : i32, i32
  }
  func.func @transform_3(%arg0: i32) -> (i32, i32) {
    %c0_i32 = arith.constant 0 : i32
    %c0_i32_0 = arith.constant 0 : i32
    return %c0_i32, %arg0 : i32, i32
  }
  func.func @transform_4(%arg0: i32) -> (i32, i32) {
    %c0_i32 = arith.constant 0 : i32
    %c0_i32_0 = arith.constant 0 : i32
    return %c0_i32, %arg0 : i32, i32
  }
}

</mosaic_0001>

<bundles_post_ra>
// kernel: _linear_bnac_call.1
= control target key start
LH: loop header
LB: loop body
LE: loop exit
PB: predicated region body
PF: predicated region fallthrough
CT: control target
= control target key end

     0   :  { %9 = vsyncpa [#allocation3], 0  ;;  %s268_s0 = inlined_call_operand.hbm [shape: f32[8,32], index: 0, kind: input, shape index: {}]   ;;  %s269_s1 = inlined_call_operand.hbm [shape: f32[32,128], index: 1, kind: input, shape index: {}]   ;;  %s270_s2 = inlined_call_operand.vmem [shape: f32[1,128], index: 2, kind: input, shape index: {}]   ;;  %s271_s3 = inlined_call_operand.vmem [shape: f32[1,128], index: 3, kind: input, shape index: {}]   ;;  %s272_s4 = inlined_call_operand.hbm [shape: f32[8,128], index: 4, kind: output, shape index: {}]  }
   0x1   :  { %10 = vsyncpa [#allocation6], 0 }
   0x2   :  { %11 = vsyncpa [#allocation4], 0  ;;  %s17_s17 = sshll.u32 %s268_s0, 4  ;;  %s223_s18 = smov [#allocation2]   ;;  %s18_s17 = int_to_ptr.hbm [resolvable:$true] %s17_s17 }
   0x3   :  { %s19_s19 = sshll.u32 %s223_s18, 4  ;;  %s27_s22 = sshll.u32 %s269_s1, 4  ;;  %s20_s19 = int_to_ptr.vmem [resolvable:$true] %s19_s19  ;;  %s28_s22 = int_to_ptr.hbm [resolvable:$true] %s27_s22 }
   0x4   :  { %22 = dma.hbm_to_vmem [thread:$0]  %s18_s17, 128, %s20_s19, [#allocation3]  }
   0x5   :  { %s224_s23 = smov [#allocation5]   ;;  %s225_s25 = smov 128  }
   0x6   :  { %s29_s24 = sshll.u32 %s224_s23, 4  ;;  %s226_s26 = smov 8   ;;  %s30_s24 = int_to_ptr.vmem [resolvable:$true] %s29_s24 }
   0x7   :  { %35 = dma.hbm_to_vmem [thread:$0]  %s28_s22, 512, %s30_s24, [#allocation6], %s225_s25, %s225_s25, %s226_s26  }
   0x8   :  { %217 = dma.done.wait [#allocation3], 128  }
   0x9   :  { %218 = vsyncadd [#allocation3], 4294967168 }
   0xa   :  { %219 = dma.done.wait [#allocation6], 512  }
   0xb   :  { %220 = vsyncadd [#allocation6], 4294966784  ;;  %v52_v0 = vld [vmem:[#allocation5 + $0x18] sm:$0xff]  ;;  %v51_v1 = vld [vmem:[#allocation5 + $0x10] sm:$0xff]  ;;  %vm53_vm0 = vcmask 261120   ;;  %s227_s29 = smov [#allocation7]  }
   0xc   :  { %69 = vmatpush.msra.mxu0 %v52_v0  ;;  %v50_v2 = vld [vmem:[#allocation5 + $0x8] sm:$0xff]  ;;  %v49_v3 = vld [vmem:[#allocation5] sm:$0xff]  ;;  %v48_v4 = vld [vmem:[#allocation2] sm:$0xff]  ;;  %s123_s30 = sshll.u32 %s227_s29, 4  ;;  %s125_s7 = sshll.u32 %s272_s4, 4  ;;  %s124_s30 = int_to_ptr.vmem [resolvable:$true] %s123_s30  ;;  %s126_s7 = int_to_ptr.hbm [resolvable:$true] %s125_s7 }
   0xd   :  { %v77_v28 = vld [vmem:[%s270_s2] sm:$0x1] }
   0xe   :  { %70 = vmatpush.msra.mxu0 %v51_v1  ;;  %v142_v33 = vld [vmem:[%s271_s3] ss:$0 sm:$0xff] }
  0x10   :  { %71 = vmatpush.msra.mxu0 %v50_v2 }
  0x12   :  { %72 = vmatpush.msra.mxu0 %v49_v3 }
  0x13   :  { %136 = vmatmul.msk.f32.vlgmr.msra.gmra.mxu0 %vm53_vm0, %v48_v4 }
  0x90   :  { %v74_v5 = vpop.f32.mrf.mxu0 }
  0x91   :  { %v79_v6 = vrot.slane %v74_v5, 4 }
  0x93   :  { %v80_v7 = vadd.f32 %v79_v6, %v74_v5 }
  0x95   :  { %v81_v8 = vrot.slane %v80_v7, 2 }
  0x97   :  { %v82_v9 = vadd.f32 %v81_v8, %v80_v7 }
  0x99   :  { %v83_v10 = vrot.slane %v82_v9, 1 }
  0x9b   :  { %v84_v11 = vadd.f32 %v83_v10, %v82_v9 }
  0x9d   :  { %v85_v12 = vmul.f32 0.125, %v84_v11 }
  0x9f   :  { %v86_v13 = vsub.f32 %v74_v5, %v85_v12 }
  0xa1   :  { %v87_v14 = vmul.f32 %v86_v13, %v86_v13 }
  0xa3   :  { %v88_v15 = vrot.slane %v87_v14, 4 }
  0xa5   :  { %v89_v16 = vadd.f32 %v88_v15, %v87_v14 }
  0xa7   :  { %v90_v17 = vrot.slane %v89_v16, 2 }
  0xa9   :  { %v91_v18 = vadd.f32 %v90_v17, %v89_v16 }
  0xab   :  { %v92_v19 = vrot.slane %v91_v18, 1 }
  0xad   :  { %v93_v20 = vadd.f32 %v92_v19, %v91_v18 }
  0xaf   :  { %v94_v21 = vmul.f32 0.125, %v93_v20 }
  0xb1   :  { %v95_v22 = vadd.f32 1e-05, %v94_v21 }
  0xb3   :  { %143 = vrsqrt.f32 %v95_v22  ;;  %vm102_vm2 = vweird.f32 %v95_v22 }
  0xb9   :  { %v144_v23 = vpop.eup %143 }
  0xba   :  { %v97_v24 = vmul.f32 %v144_v23, %v95_v22  ;;  %vm103_vm1 = vweird.f32 %v144_v23 }
  0xbb   :  { %vm104_vm3 = vmor %vm102_vm2, %vm103_vm1 }
  0xbc   :  { %v98_v25 = vmul.f32 %v144_v23, %v97_v24 }
  0xbe   :  { %v99_v26 = vmul.f32 0.5, %v98_v25 }
  0xc0   :  { %v100_v27 = vsub.f32 1.5, %v99_v26 }
  0xc2   :  { %v101_v29 = vmul.f32 %v144_v23, %v100_v27 }
  0xc4   :  { %v105_v30 = vsel %vm104_vm3, %v144_v23, %v101_v29 }
  0xc5   :  { %v106_v31 = vmul.f32 %v105_v30, %v77_v28 }
  0xc7   :  { %v108_v32 = vperm.slane %v106_v31, 0 }
  0xc9   :  { %v110_v34 = vmul.f32 %v108_v32, %v86_v13 }
  0xcb   :  { %v114_v35 = vadd.f32 %v142_v33, %v110_v34 }
  0xcd   :  { %v115_v36 = vmul.f32 0.01, %v114_v35 }
  0xcf   :  { %v116_v37 = vmax.f32 %v114_v35, %v115_v36 }
  0xd1   :  { %117 = vst [vmem:[#allocation7] sm:$0xff] %v116_v37 }
  0xd2   :  { %128 = dma.vmem_to_hbm [thread:$0]  %s124_s30, 128, %s126_s7, [#allocation4]  }
  0xd3   :  { %221 = dma.done.wait [#allocation4], 128  }
  0xd4   :  { %222 = vsyncadd [#allocation4], 4294967168 }
  0xd5   :  { %133 = vsyncpa [#allocation3], 1 }
  0xd6   :  { %134 = vsyncpa [#allocation6], 1 }
  0xd7   :  { %135 = vsyncpa [#allocation4], 1 }

</bundles_post_ra>
